<compile_context>
chip_gen: v7x
topology: tpu7x:2x2x1
jax: 0.10.0
libtpu: 0.0.40
codegen_flags: <defaults>
</compile_context>

<pallas_src>
import functools

import jax
import jax.numpy as jnp
from jax import lax
from jax.experimental import pallas as pl
from jax.experimental.pallas import tpu as pltpu
import numpy as np

BN_EPS = 1e-4


def _cbn_kernel(x_ref, gb_ref, o_ref, *, inv_count, low_precision_apply):
    # x_ref:  (N, Ct, HWp)  input dtype
    # gb_ref: (N, Ct, 2)    f32, [..., 0] = gain, [..., 1] = bias
    #
    # --- Stats pass: single traversal, f32 accumulation ------------------
    # Padding columns (if any) are zeros -> contribute 0 to both sums;
    # inv_count uses the un-padded element count, so stats are exact.
    xf = x_ref[...].astype(jnp.float32)                 # consumed by reductions only
    sum_nc = jnp.sum(xf, axis=2, keepdims=True)         # (N, Ct, 1)
    sumsq_nc = jnp.sum(xf * xf, axis=2, keepdims=True)  # (N, Ct, 1)
    mean_c = jnp.sum(sum_nc, axis=0, keepdims=True) * inv_count      # (1, Ct, 1)
    ex2_c = jnp.sum(sumsq_nc, axis=0, keepdims=True) * inv_count     # (1, Ct, 1)
    var_c = jnp.maximum(ex2_c - mean_c * mean_c, 0.0)                # biased var
    inv_std = lax.rsqrt(var_c + BN_EPS)                               # (1, Ct, 1)

    # Fused conditional affine: o = x * scale + shift
    gain = gb_ref[:, :, 0:1]                             # (N, Ct, 1) f32
    bias = gb_ref[:, :, 1:2]                             # (N, Ct, 1) f32
    scale = gain * inv_std                               # (N, Ct, 1)
    shift = bias - mean_c * scale                        # (N, Ct, 1)

    # --- Apply pass: re-read x_ref (no f32 block copy kept live) ---------
    x = x_ref[...]
    if low_precision_apply:
        o_ref[...] = (x * scale.astype(x.dtype)
                      + shift.astype(x.dtype)).astype(o_ref.dtype)
    else:
        o_ref[...] = (x.astype(jnp.float32) * scale + shift).astype(o_ref.dtype)


def _choose_c_tile(N, C, HWp, itemsize, *, small_vmem):
    """Sublane-aligned channel tile sized for a per-generation VMEM budget.

    Live VMEM ~= 2x double-buffered x in + 2x out + ~2x f32 stat temporaries
    ~= 6-8 block-equivalents, so the x-block target is kept well below the
    scoped limit (2 MiB on 64-MiB-class parts, 6 MiB on 128-MiB parts).
    """
    target_block_bytes = (2 if small_vmem else 6) * 1024 * 1024
    # >=2 grid steps for pipelining; >=4 on v7x-class parts (2 TCs x 2 steps).
    min_steps = 4 if small_vmem else 2

    sub = 8 if itemsize >= 4 else 16            # f32 vs bf16/fp16 sublane packing
    if C <= sub:
        return C                                # cannot legally tile finer than C

    per_channel = max(1, N * HWp * itemsize)
    # Round DOWN to the sublane multiple so alignment never overshoots the
    # budget; floor at `sub` (smallest legal tile when c_tile != C).  For very
    # large N*HW even `sub` channels may exceed the target — unavoidable with
    # channel-only tiling.
    c_tile = max(sub, (target_block_bytes // per_channel // sub) * sub)

    # Cap so the grid has ~min_steps steps (pipeline overlap + megacore).
    cap = (pl.cdiv(C, min_steps) // sub) * sub
    if cap >= sub:
        c_tile = min(c_tile, cap)

    # Never collapse to a single full-C block when splitting is legal
    # (grid=(1,) disables double-buffering): largest sublane multiple < C.
    if c_tile >= C:
        c_tile = max(sub, ((C - 1) // sub) * sub)
    return c_tile


def conditional_batchnorm2d(x_nchw, y, w_gain, w_bias, *, c_tile=None):
    """x_nchw: (N, C, H, W), y: (N, Z), w_gain/w_bias: (C, Z) (nn.Linear layout)."""
    N, C, H, W = x_nchw.shape
    HW = H * W
    out_dtype = x_nchw.dtype
    itemsize = jnp.dtype(out_dtype).itemsize

    # Lane-dense layout: pad HW up to a multiple of 128.  Zero padding does not
    # affect sum / sum-of-squares; inv_count uses the real element count.
    HWp = (-(-HW // 128)) * 128
    x3 = x_nchw.reshape(N, C, HW)
    if HWp != HW:
        x3 = jnp.pad(x3, ((0, 0), (0, 0), (0, HWp - HW)))

    # Hoisted tiny conditional-affine matmuls (negligible FLOPs); gain & bias
    # packed into one (N, C, 2) f32 side input -> one small DMA per grid step.
    yf = y.astype(jnp.float32)
    gain = 1.0 + yf @ w_gain.astype(jnp.float32).T        # (N, C)
    bias = yf @ w_bias.astype(jnp.float32).T              # (N, C)
    gb = jnp.stack([gain, bias], axis=-1)                 # (N, C, 2) f32

    # Per-generation VMEM sizing.
    try:
        vmem_cap = int(pltpu.get_tpu_info().vmem_capacity_bytes)
    except Exception:
        vmem_cap = 128 * 1024 * 1024
    small_vmem = vmem_cap <= 64 * 1024 * 1024              # v7x-class part

    if c_tile is None:
        c_tile = _choose_c_tile(N, C, HWp, itemsize, small_vmem=small_vmem)
    grid = (pl.cdiv(C, c_tile),)
    # NOTE: when c_tile does not divide C, the padded tail block computes
    # rsqrt over uninitialized channels; results land only in discarded
    # padding (harmless, but visible if debug checks are enabled).

    # bf16 apply FMA on bf16-VPU parts only (v6e/v7x); v5e has no bf16 VALU.
    try:
        kind = jax.devices()[0].device_kind.lower()
    except Exception:
        kind = ""
    is_v5e = ("v5e" in kind) or ("v5 lite" in kind) or ("v5lite" in kind)
    low_precision_apply = (jnp.dtype(out_dtype) == jnp.dtype(jnp.bfloat16)
                           and not is_v5e)

    kernel = functools.partial(
        _cbn_kernel,
        inv_count=1.0 / float(N * HW),
        low_precision_apply=low_precision_apply,
    )

    cost = pl.CostEstimate(
        flops=5 * N * C * HW,               # sum, sq, sumsq, fma (rough)
        transcendentals=C,                  # rsqrt per channel
        bytes_accessed=2 * N * C * HWp * itemsize + N * C * 8,
    )

    out3 = pl.pallas_call(
        kernel,
        out_shape=jax.ShapeDtypeStruct((N, C, HWp), out_dtype),
        grid_spec=pltpu.PrefetchScalarGridSpec(
            num_scalar_prefetch=0,
            grid=grid,
            in_specs=[
                pl.BlockSpec((N, c_tile, HWp), lambda c: (0, c, 0)),  # x
                pl.BlockSpec((N, c_tile, 2), lambda c: (0, c, 0)),    # gain|bias
            ],
            out_specs=pl.BlockSpec((N, c_tile, HWp), lambda c: (0, c, 0)),
        ),
        compiler_params=pltpu.CompilerParams(
            dimension_semantics=("parallel",),                    # shard C blocks
            vmem_limit_bytes=(28 if small_vmem else 64) * 1024 * 1024,
        ),
        cost_estimate=cost,
    )(x3, gb)

    if HWp != HW:
        out3 = out3[:, :, :HW]
    return out3.reshape(N, C, H, W)


def _reference(x_nchw, y, w_gain, w_bias):
    """Pure-JAX reference mirroring the PyTorch forward (training-mode BN)."""
    gain = 1.0 + y @ w_gain.T               # (N, C)
    bias = y @ w_bias.T                     # (N, C)
    mean = jnp.mean(x_nchw, axis=(0, 2, 3))                       # (C,)
    var = jnp.mean((x_nchw - mean[None, :, None, None]) ** 2,
                   axis=(0, 2, 3))                                # biased
    xhat = (x_nchw - mean[None, :, None, None]) * \
        lax.rsqrt(var + BN_EPS)[None, :, None, None]
    return xhat * gain[:, :, None, None] + bias[:, :, None, None]


if __name__ == "__main__":
    # Small shapes consistent with the module's forward:
    N, C, H, W = 2, 4, 16, 16          # num_features = C = 4
    Z = 32                             # z_dims_after_concat

    key = jax.random.PRNGKey(0)
    kx, ky, kg, kb = jax.random.split(key, 4)

    x = jax.random.normal(kx, (N, C, H, W), dtype=jnp.float32)
    y = jax.random.normal(ky, (N, Z), dtype=jnp.float32)

    # Deterministic "nn.Linear(bias=False)"-style weight init
    # (kaiming-uniform bound = 1/sqrt(in_features)).
    bound = 1.0 / np.sqrt(Z)
    w_gain = jax.random.uniform(kg, (C, Z), minval=-bound, maxval=bound,
                                dtype=jnp.float32)
    w_bias = jax.random.uniform(kb, (C, Z), minval=-bound, maxval=bound,
                                dtype=jnp.float32)

    out = conditional_batchnorm2d(x, y, w_gain, w_bias)
    out = jax.block_until_ready(out)

    ref = _reference(x, y, w_gain, w_bias)
    np.testing.assert_allclose(np.asarray(out), np.asarray(ref),
                               rtol=1e-5, atol=1e-5)
    print("KERNEL_OK")
</pallas_src>

<mosaic_0001>
module attributes {stable_mosaic.version = 11 : i64} {
  func.func @_cbn_kernel(%arg0: i32, %arg1: memref<2x4x256xf32, #tpu.memory_space<vmem>>, %arg2: memref<2x4x2xf32, #tpu.memory_space<vmem>>, %arg3: memref<2x4x256xf32, #tpu.memory_space<vmem>>) attributes {dimension_semantics = [#tpu.dimension_semantics<parallel>], iteration_bounds = array<i64: 1>, scalar_prefetch = 0 : i64, scratch_operands = 0 : i64, tpu.core_type = #tpu.core_type<tc>, window_params = [{transform_indices = @transform_0, window_bounds = array<i64: 2, 4, 256>}, {transform_indices = @transform_1, window_bounds = array<i64: 2, 4, 2>}, {transform_indices = @transform_2, window_bounds = array<i64: 2, 4, 256>}]} {
    %c0 = arith.constant 0 : index
    %c0_0 = arith.constant 0 : index
    %c0_1 = arith.constant 0 : index
    %0 = vector.load %arg1[%c0, %c0_0, %c0_1] : memref<2x4x256xf32, #tpu.memory_space<vmem>>, vector<2x4x256xf32>
    %cst = arith.constant dense<0.000000e+00> : vector<2x4xf32>
    %1 = vector.multi_reduction <add>, %0, %cst [2] : vector<2x4x256xf32> to vector<2x4xf32>
    %2 = vector.shape_cast %1 : vector<2x4xf32> to vector<2x4x1xf32>
    %3 = arith.mulf %0, %0 : vector<2x4x256xf32>
    %cst_2 = arith.constant dense<0.000000e+00> : vector<2x4xf32>
    %4 = vector.multi_reduction <add>, %3, %cst_2 [2] : vector<2x4x256xf32> to vector<2x4xf32>
    %5 = vector.shape_cast %4 : vector<2x4xf32> to vector<2x4x1xf32>
    %cst_3 = arith.constant dense<0.000000e+00> : vector<4x1xf32>
    %6 = vector.multi_reduction <add>, %2, %cst_3 [0] : vector<2x4x1xf32> to vector<4x1xf32>
    %7 = vector.shape_cast %6 : vector<4x1xf32> to vector<1x4x1xf32>
    %cst_4 = arith.constant 0.001953125 : f32
    %8 = vector.broadcast %cst_4 : f32 to vector<1x4x1xf32>
    %9 = arith.mulf %7, %8 : vector<1x4x1xf32>
    %cst_5 = arith.constant dense<0.000000e+00> : vector<4x1xf32>
    %10 = vector.multi_reduction <add>, %5, %cst_5 [0] : vector<2x4x1xf32> to vector<4x1xf32>
    %11 = vector.shape_cast %10 : vector<4x1xf32> to vector<1x4x1xf32>
    %cst_6 = arith.constant 0.001953125 : f32
    %12 = vector.broadcast %cst_6 : f32 to vector<1x4x1xf32>
    %13 = arith.mulf %11, %12 : vector<1x4x1xf32>
    %14 = arith.mulf %9, %9 : vector<1x4x1xf32>
    %15 = arith.subf %13, %14 : vector<1x4x1xf32>
    %cst_7 = arith.constant 0.000000e+00 : f32
    %16 = vector.broadcast %cst_7 : f32 to vector<1x4x1xf32>
    %17 = arith.maximumf %15, %16 : vector<1x4x1xf32>
    %cst_8 = arith.constant 9.99999974E-5 : f32
    %18 = vector.broadcast %cst_8 : f32 to vector<1x4x1xf32>
    %19 = arith.addf %17, %18 : vector<1x4x1xf32>
    %20 = math.rsqrt %19 : vector<1x4x1xf32>
    %c0_9 = arith.constant 0 : index
    %c0_10 = arith.constant 0 : index
    %c0_11 = arith.constant 0 : index
    %21 = vector.load %arg2[%c0_9, %c0_10, %c0_11] : memref<2x4x2xf32, #tpu.memory_space<vmem>>, vector<2x4x1xf32>
    %c0_12 = arith.constant 0 : index
    %c0_13 = arith.constant 0 : index
    %c1 = arith.constant 1 : index
    %22 = vector.load %arg2[%c0_12, %c0_13, %c1] : memref<2x4x2xf32, #tpu.memory_space<vmem>>, vector<2x4x1xf32>
    %23 = vector.broadcast %20 : vector<1x4x1xf32> to vector<2x4x1xf32>
    %24 = arith.mulf %21, %23 : vector<2x4x1xf32>
    %25 = vector.broadcast %9 : vector<1x4x1xf32> to vector<2x4x1xf32>
    %26 = arith.mulf %25, %24 : vector<2x4x1xf32>
    %27 = arith.subf %22, %26 : vector<2x4x1xf32>
    %c0_14 = arith.constant 0 : index
    %c0_15 = arith.constant 0 : index
    %c0_16 = arith.constant 0 : index
    %28 = vector.load %arg1[%c0_14, %c0_15, %c0_16] : memref<2x4x256xf32, #tpu.memory_space<vmem>>, vector<2x4x256xf32>
    %29 = vector.broadcast %24 : vector<2x4x1xf32> to vector<2x4x256xf32>
    %30 = arith.mulf %28, %29 : vector<2x4x256xf32>
    %31 = vector.broadcast %27 : vector<2x4x1xf32> to vector<2x4x256xf32>
    %32 = arith.addf %30, %31 : vector<2x4x256xf32>
    %c0_17 = arith.constant 0 : index
    %c0_18 = arith.constant 0 : index
    %c0_19 = arith.constant 0 : index
    %33 = vector.load %arg3[%c0_17, %c0_18, %c0_19] : memref<2x4x256xf32, #tpu.memory_space<vmem>>, vector<2x4x256xf32>
    tpu.vector_store %arg3[%c0_17, %c0_18, %c0_19], %32 {strides = array<i32>} : memref<2x4x256xf32, #tpu.memory_space<vmem>>, vector<2x4x256xf32>,
    return
  }
  func.func @transform_0(%arg0: i32) -> (i32, i32, i32) {
    %c0_i32 = arith.constant 0 : i32
    %c0_i32_0 = arith.constant 0 : i32
    %c0_i32_1 = arith.constant 0 : i32
    return %c0_i32, %arg0, %c0_i32_0 : i32, i32, i32
  }
  func.func @transform_1(%arg0: i32) -> (i32, i32, i32) {
    %c0_i32 = arith.constant 0 : i32
    %c0_i32_0 = arith.constant 0 : i32
    %c0_i32_1 = arith.constant 0 : i32
    return %c0_i32, %arg0, %c0_i32_0 : i32, i32, i32
  }
  func.func @transform_2(%arg0: i32) -> (i32, i32, i32) {
    %c0_i32 = arith.constant 0 : i32
    %c0_i32_0 = arith.constant 0 : i32
    %c0_i32_1 = arith.constant 0 : i32
    return %c0_i32, %arg0, %c0_i32_0 : i32, i32, i32
  }
}

</mosaic_0001>

<bundles_post_ra>
// kernel: tpu_custom_call.1
= control target key start
LH: loop header
LB: loop body
LE: loop exit
PB: predicated region body
PF: predicated region fallthrough
CT: control target
= control target key end

     0   :  { %7 = vsyncpa [#allocation3], 0  ;;  %s364_s0 = inlined_call_operand.hbm [shape: f32[2,4,256], index: 0, kind: input, shape index: {}]   ;;  %s365_s1 = inlined_call_operand.hbm [shape: f32[2,4,2], index: 1, kind: input, shape index: {}]   ;;  %s366_s2 = inlined_call_operand.hbm [shape: f32[2,4,256], index: 2, kind: output, shape index: {}]  }
   0x1   :  { %8 = vsyncpa [#allocation6], 0 }
   0x2   :  { %9 = vsyncpa [#allocation4], 0  ;;  %s268_s9 = smov [#allocation2]   ;;  %s196_s13 = scalar_lea.hbm %s364_s0, 256 }
   0x3   :  { %s15_s10 = sshll.u32 %s268_s9, 4  ;;  %p197_p0 = scmp.ne.s32.totalorder %s364_s0, %s196_s13  ;;  %s16_s10 = int_to_ptr.vmem [resolvable:$true] %s15_s10 }
   0x4   :  { %p200_p1 = scmp.lt.u32.totalorder %s196_s13, %s364_s0 }
   0x6   :  { %p202_p2 = pnand %p200_p1, %p197_p0 }
   0x8   :  { %205 = shalt.err (!%p202_p2)
}
   0x9   :  { %s206_s18 = scalar_lea.vmem %s16_s10, 256  ;;  %p211_p4 = scmp.lt.s32.totalorder %s16_s10, %s16_s10 }
   0xa   :  { %p207_p3 = scmp.ne.s32.totalorder %s16_s10, %s206_s18  ;;  %p212_p5 = scmp.lt.s32.totalorder %s206_s18, %s206_s18 }
   0xc   :  { %p213_p6 = por %p212_p5, %p211_p4 }
   0xe   :  { %p214_p7 = pnand %p213_p6, %p207_p3 }
  0x10   :  { %217 = shalt.err (!%p214_p7)
}
  0x11   :  { %s269_s19 = smov 128   ;;  %s270_s20 = smov 8  }
  0x12   :  { %21 = dma.hbm_to_vmem [thread:$0]  %s364_s0, 256, %s16_s10, [#allocation3], %s269_s19, %s269_s19, %s270_s20  }
  0x13   :  { %s271_s23 = smov [#allocation5]   ;;  %s218_s27 = scalar_lea.hbm %s365_s1, 128 }
  0x14   :  { %s27_s24 = sshll.u32 %s271_s23, 4  ;;  %p219_p8 = scmp.ne.s32.totalorder %s365_s1, %s218_s27  ;;  %s28_s24 = int_to_ptr.vmem [resolvable:$true] %s27_s24 }
  0x15   :  { %p222_p9 = scmp.lt.u32.totalorder %s218_s27, %s365_s1 }
  0x17   :  { %p224_p10 = pnand %p222_p9, %p219_p8 }
  0x19   :  { %227 = shalt.err (!%p224_p10)
}
  0x1a   :  { %s228_s4 = scalar_lea.vmem %s28_s24, 128  ;;  %p233_p12 = scmp.lt.s32.totalorder %s28_s24, %s28_s24 }
  0x1b   :  { %p229_p11 = scmp.ne.s32.totalorder %s28_s24, %s228_s4  ;;  %p234_p13 = scmp.lt.s32.totalorder %s228_s4, %s228_s4 }
  0x1d   :  { %p235_p0 = por %p234_p13, %p233_p12 }
  0x1f   :  { %p236_p1 = pnand %p235_p0, %p229_p11 }
  0x21   :  { %239 = shalt.err (!%p236_p1)
}
  0x22   :  { %s272_s0 = smov 64   ;;  %s273_s5 = smov 4  }
  0x23   :  { %33 = dma.hbm_to_vmem [thread:$0]  %s365_s1, 128, %s28_s24, [#allocation6], %s272_s0, %s272_s0, %s273_s5  }
  0x24   :  { %262 = dma.done.wait [#allocation3], 256  }
  0x25   :  { %263 = vsyncadd [#allocation3], 4294967040 }
  0x26   :  { %264 = dma.done.wait [#allocation6], 128  }
  0x27   :  { %265 = vsyncadd [#allocation6], 4294967168  ;;  %vm48_vm0 = vcmask 1043456   ;;  %v321_v0 = vld [vmem:[#allocation2] sm:$0xff]  ;;  %v323_v1 = vld [vmem:[#allocation2 + $0x8] sm:$0xff]  ;;  %v274_v20 = vmov 0   ;;  %v117_v51 = vlaneseq }
  0x28   :  { %v44_v2 = vcombine.high %v321_v0, %v321_v0  ;;  %v49_v3 = vsel %vm48_vm0, %v321_v0, 0.0  ;;  %v59_v4 = vmul.f32 %v321_v0, %v321_v0  ;;  %v45_v5 = vcombine.high %v323_v1, %v323_v1  ;;  %189 = vset.pattern.permute.xlu1 %v274_v20  ;;  %v91_v38 = vld [vmem:[#allocation5 + $0x4] sm:$0xf]  ;;  %v90_v39 = vld [vmem:[#allocation5] sm:$0xf]  ;;  %s276_s1 = smov 1  }
  0x29   :  { %v54_v6 = vsel %vm48_vm0, %v323_v1, 0.0  ;;  %v60_v7 = vmul.f32 %v323_v1, %v323_v1  ;;  %v275_v37 = vmov 1   ;;  %v277_v49 = vmov 839922192   ;;  %s278_s8 = smov [#allocation7]  }
  0x2a   :  { %v50_v8 = vsel %vm48_vm0, %v44_v2, 0.0  ;;  %v63_v9 = vcombine.high %v59_v4, %v59_v4  ;;  %v67_v10 = vsel %vm48_vm0, %v59_v4, 0.0  ;;  %v55_v11 = vsel %vm48_vm0, %v45_v5, 0.0  ;;  %190 = vset.pattern.permute.xlu0 %v275_v37  ;;  %s165_s9 = sshll.u32 %s278_s8, 4  ;;  %s166_s9 = int_to_ptr.vmem [resolvable:$true] %s165_s9 }
  0x2b   :  { %v51_v12 = vadd.f32 %v50_v8, %v49_v3  ;;  %v64_v13 = vcombine.high %v60_v7, %v60_v7  ;;  %v72_v15 = vsel %vm48_vm0, %v60_v7, 0.0  ;;  %v56_v17 = vadd.f32 %v55_v11, %v54_v6  ;;  %s240_s10 = scalar_lea.vmem %s166_s9, 256  ;;  %p245_p3 = scmp.lt.s32.totalorder %s166_s9, %s166_s9 }
  0x2c   :  { %v68_v14 = vsel %vm48_vm0, %v63_v9, 0.0  ;;  %v115_v50 = vunpack.c.l.s4 %v277_v49  ;;  %v118_v54 = vshrl.u32 %v117_v51, 7  ;;  %p241_p2 = scmp.ne.s32.totalorder %s166_s9, %s240_s10  ;;  %p246_p4 = scmp.lt.s32.totalorder %s240_s10, %s240_s10 }
  0x2d   :  { %52 = vadd.xlane.f32.xlu0 %v51_v12  ;;  %v69_v16 = vadd.f32 %v68_v14, %v67_v10  ;;  %v73_v18 = vsel %vm48_vm0, %v64_v13, 0.0 }
  0x2e   :  { %v74_v19 = vadd.f32 %v73_v18, %v72_v15  ;;  %v116_v53 = vunpack.c.0.s8 %v115_v50  ;;  %p247_p5 = por %p246_p4, %p245_p3 }
  0x2f   :  { %70 = vadd.xlane.f32.xlu1 %v69_v16 }
  0x30   :  { %v119_v55 = vsub.s32 %v116_v53, %v118_v54  ;;  %p248_p6 = pnand %p247_p5, %p241_p2 }
  0x31   :  { %57 = vadd.xlane.f32.xlu0 %v56_v17 }
  0x33   :  { %75 = vadd.xlane.f32.xlu1 %v74_v19 }
  0xba   :  { %v53_v21 = vpop.xlane.xlu0 %52 }
  0xbb   :  { %v77_v24 = vsel %vm48_vm0, %v53_v21, 0.0 }
  0xbc   :  { %v71_v22 = vpop.xlane.xlu1 %70 }
  0xbd   :  { %v81_v28 = vsel %vm48_vm0, %v71_v22, 0.0 }
  0xbe   :  { %v58_v23 = vpop.xlane.xlu0 %57 }
  0xbf   :  { %v78_v25 = vsel %vm48_vm0, %v58_v23, 0.0 }
  0xc0   :  { %v79_v26 = vadd.f32 %v78_v25, %v77_v24  ;;  %v76_v27 = vpop.xlane.xlu1 %75 }
  0xc1   :  { %v82_v29 = vsel %vm48_vm0, %v76_v27, 0.0 }
  0xc2   :  { %v80_v30 = vmul.f32 0.001953125, %v79_v26  ;;  %v83_v31 = vadd.f32 %v82_v29, %v81_v28 }
  0xc4   :  { %v84_v32 = vmul.f32 0.001953125, %v83_v31  ;;  %v85_v33 = vmul.f32 %v80_v30, %v80_v30 }
  0xc6   :  { %v86_v34 = vsub.f32 %v84_v32, %v85_v33 }
  0xc8   :  { %v87_v35 = vmax.f32 %v86_v34, 0.0 }
  0xca   :  { %v88_v36 = vadd.f32 0.0001, %v87_v35 }
  0xcc   :  { %194 = vrsqrt.f32 %v88_v36 }
  0xd6   :  { %v195_v40 = vpop.eup %194 }
  0xd7   :  { %v93_v41 = vmul.f32 %v195_v40, %v91_v38  ;;  %v92_v42 = vmul.f32 %v195_v40, %v90_v39 }
  0xd9   :  { %v95_v43 = vmul.f32 %v93_v41, %v80_v30  ;;  %v94_v44 = vmul.f32 %v92_v42, %v80_v30 }
  0xdb   :  { %100 = vrot.lane.b32.xlu1 %v95_v43, %s276_s1  ;;  %98 = vrot.lane.b32.xlu0 %v94_v44, %s276_s1 }
  0xdf   :  { %108 = vperm.xlu1 %189, %v92_v42  }
  0xe3   :  { %112 = vperm.xlu1 %189, %v93_v41  }
  0xe7   :  { %191 = vset.pattern.permute.xlu1 %v275_v37 }
 0x14d   :  { %v101_v45 = vpop.permute.xlu1 %100  ;;  %v99_v46 = vpop.permute.xlu0 %98 }
 0x14e   :  { %v105_v47 = vsub.f32 %v91_v38, %v101_v45  ;;  %v104_v48 = vsub.f32 %v90_v39, %v99_v46 }
 0x150   :  { %138 = vperm.xlu1 %191, %v105_v47   ;;  %134 = vperm.xlu0 %190, %v104_v48  }
 0x15e   :  { %v109_v52 = vpop.permute.xlu1 %108 }
 0x15f   :  { %v120_v57 = vrot.slane %v109_v52, %v119_v55 }
 0x161   :  { %v130_v61 = vmul.f32 %v120_v57, %v321_v0 }
 0x162   :  { %v113_v56 = vpop.permute.xlu1 %112 }
 0x163   :  { %v127_v58 = vrot.slane %v113_v56, %v119_v55 }
 0x165   :  { %v131_v62 = vmul.f32 %v127_v58, %v323_v1 }
 0x1cf   :  { %v139_v59 = vpop.permute.xlu1 %138  ;;  %v135_v60 = vpop.permute.xlu0 %134 }
 0x1d0   :  { %v153_v63 = vrot.slane %v139_v59, %v119_v55  ;;  %v146_v2 = vrot.slane %v135_v60, %v119_v55 }
 0x1d2   :  { %v157_v3 = vadd.f32 %v153_v63, %v131_v62  ;;  %v156_v4 = vadd.f32 %v146_v2, %v130_v61 }
 0x1d4   :  { %159 = vst [vmem:[#allocation7 + $0x8] sm:$0xff] %v157_v3  ;;  %158 = vst [vmem:[#allocation7] sm:$0xff] %v156_v4 }
 0x1d5   :  { %251 = shalt.err (!%p248_p6)
}
 0x1d6   :  { %s252_s13 = scalar_lea.hbm %s366_s2, 256 }
 0x1d7   :  { %p253_p7 = scmp.ne.s32.totalorder %s366_s2, %s252_s13  ;;  %p256_p8 = scmp.lt.u32.totalorder %s252_s13, %s366_s2 }
 0x1d9   :  { %p258_p9 = pnand %p256_p8, %p253_p7 }
 0x1db   :  { %261 = shalt.err (!%p258_p9)
}
 0x1dc   :  { %171 = dma.vmem_to_hbm [thread:$0]  %s166_s9, 256, %s366_s2, [#allocation4], %s269_s19, %s269_s19, %s270_s20  }
 0x1dd   :  { %266 = dma.done.wait [#allocation4], 256  }
 0x1de   :  { %267 = vsyncadd [#allocation4], 4294967040 }
 0x1df   :  { %175 = vsyncpa [#allocation3], 1 }
 0x1e0   :  { %176 = vsyncpa [#allocation6], 1 }
 0x1e1   :  { %177 = vsyncpa [#allocation4], 1 }

</bundles_post_ra>
